<compile_context>
chip_gen: v5e
topology: v5e:2x2
jax: 0.10.0
libtpu: 0.0.40
codegen_flags: <defaults>
</compile_context>

<pallas_src>
import functools

import jax
import jax.numpy as jnp
from jax.experimental import pallas as pl
from jax.experimental.pallas import tpu as pltpu


_LANE = 128
# Lanes (batch rows) per grid step.  Pipelined VMEM at this tile:
#   emb (10,T) bf16 -> padded (16,T)*2B = 32 B/lane per buffer, x2 buffers
#   score out (1,T) f32 / label (1,T) bf16 -> <= 32 B/lane per buffer, x2
# => ~16-20 MiB total at T=131072 (+ a couple MiB of in-kernel f32 temporaries),
# under the 32 MiB scoped-VMEM budget set below (safe on v7x's 64 MiB physical
# VMEM too), while each step still streams several MB of payload.
_MAX_B_TILE = 131072
_VMEM_LIMIT_BYTES = 32 * 1024 * 1024


def _fold_params(params):
    """Fold Linear(10,10) -> Linear(10,1) into a single affine map.

    NOTE: this fold is exact ONLY because PointWise has no nonlinearity between
    the two Linears; if an activation is ever added, this kernel must change.
    Returns an (11,) f32 vector [w_eff(10), b_eff] destined for SMEM.
    """
    w1 = params["w1"].astype(jnp.float32)    # (10, 10) (out, in)
    b1 = params["b1"].astype(jnp.float32)    # (10,)
    w2 = params["w2"].astype(jnp.float32)    # (1, 10)  (out, in)
    b2 = params["b2"].astype(jnp.float32)    # (1,)
    w_eff = (w1.T @ w2.T).reshape(10)        # (10,)
    b_eff = (b1 @ w2.T + b2).reshape(1)      # (1,)
    return jnp.concatenate([w_eff, b_eff])   # (11,)


def _tiling(batch):
    """(lane_tile, batch padded to a 128-lane multiple)."""
    b128 = pl.cdiv(batch, _LANE) * _LANE
    return min(_MAX_B_TILE, b128), b128


def _affine_rows(w_ref, emb_ref):
    """score row = sum_k emb[k, :] * w[k] + b, upcasting bf16->f32 after load."""
    s = emb_ref[0:1, :].astype(jnp.float32) * w_ref[0]
    for k in range(1, 10):
        s = s + emb_ref[k:k + 1, :].astype(jnp.float32) * w_ref[k]
    return s + w_ref[10]


def _score_kernel(w_ref, emb_ref, out_ref):
    # w_ref: (11,) f32 SMEM; emb_ref: (10, T) bf16 VMEM; out_ref: (1, T) f32.
    out_ref[...] = _affine_rows(w_ref, emb_ref)


def _mse_kernel(w_ref, emb_ref, lbl_ref, sse_ref, *, batch, tile):
    # Per-step masked squared-error partial sum -> independent (1, 1) block.
    step = pl.program_id(0)
    err = _affine_rows(w_ref, emb_ref) - lbl_ref[...].astype(jnp.float32)
    lane = jax.lax.broadcasted_iota(jnp.int32, err.shape, 1) + step * tile
    err = jnp.where(lane < batch, err, 0.0)   # mask 128-lane pad / ragged tail
    sse_ref[...] = jnp.sum(err * err, axis=1, keepdims=True)


def pointwise_forward_fused(emb_fm, params, label=None):
    """Fast path: fused feature-major embeddings.

    emb_fm: (10, B) -- rows 0-4 = user features, rows 5-9 = item features.
            Preferably already bf16 and produced in this layout upstream.
    params: dict with w1 (10,10), b1 (10,), w2 (1,10), b2 (1,)  (torch layout).
    label:  optional (B,) -> scalar MSE loss; otherwise per-example scores (B,).
    """
    feat, B = emb_fm.shape
    assert feat == 10, "expected fused (10, B) feature-major embeddings"
    w = _fold_params(params)
    emb_fm = emb_fm.astype(jnp.bfloat16)              # no-op if already bf16
    tile, b128 = _tiling(B)
    if b128 != B:                                     # pad only to 128 lanes
        emb_fm = jnp.pad(emb_fm, ((0, 0), (0, b128 - B)))
    nsteps = pl.cdiv(b128, tile)

    w_spec = pl.BlockSpec(memory_space=pltpu.MemorySpace.SMEM)  # whole (11,) in SMEM
    emb_spec = pl.BlockSpec((10, tile), lambda i: (0, i))       # lane-dense input
    row_spec = pl.BlockSpec((1, tile), lambda i: (0, i))
    cparams = pltpu.CompilerParams(
        dimension_semantics=("parallel",),            # megacore-friendly (v7x)
        vmem_limit_bytes=_VMEM_LIMIT_BYTES)

    if label is None:
        scores = pl.pallas_call(
            _score_kernel,
            out_shape=jax.ShapeDtypeStruct((1, b128), jnp.float32),
            grid=(nsteps,),
            in_specs=[w_spec, emb_spec],
            out_specs=row_spec,
            compiler_params=cparams,
        )(w, emb_fm)[0]
        return scores if b128 == B else scores[:B]    # matches torch .squeeze()

    lbl = label.astype(jnp.bfloat16).reshape(1, B)
    if b128 != B:
        lbl = jnp.pad(lbl, ((0, 0), (0, b128 - B)))
    partial = pl.pallas_call(
        functools.partial(_mse_kernel, batch=B, tile=tile),
        out_shape=jax.ShapeDtypeStruct((nsteps, 1, 1), jnp.float32),
        grid=(nsteps,),
        in_specs=[w_spec, emb_spec, row_spec],
        out_specs=pl.BlockSpec((None, 1, 1), lambda i: (i, 0, 0)),
        compiler_params=cparams,
    )(w, emb_fm, lbl)
    return jnp.sum(partial) / B                       # MSELoss mean reduction


def pointwise_forward(user_embedding, item_embedding, params, label=None):
    """PyTorch-layout entry point: (B,5)+(B,5) batch-major embeddings.

    TODO(synk): this relayout (concat + transpose + bf16 cast) should be done by
    the upstream embedding producer; kept here only for API compatibility.
    """
    emb_fm = jnp.concatenate(
        [user_embedding.T, item_embedding.T], axis=0).astype(jnp.bfloat16)
    return pointwise_forward_fused(emb_fm, params, label)


def init_params(key):
    """Deterministic init mimicking torch.nn.Linear default (uniform +-1/sqrt(fan_in))."""
    k1, k2, k3, k4 = jax.random.split(key, 4)
    bound = 1.0 / jnp.sqrt(10.0)
    w1 = jax.random.uniform(k1, (10, 10), jnp.float32, -bound, bound)  # (out, in)
    b1 = jax.random.uniform(k2, (10,), jnp.float32, -bound, bound)
    w2 = jax.random.uniform(k3, (1, 10), jnp.float32, -bound, bound)   # (out, in)
    b2 = jax.random.uniform(k4, (1,), jnp.float32, -bound, bound)
    return {"w1": w1, "b1": b1, "w2": w2, "b2": b2}


def _reference_forward(user_embedding, item_embedding, params, label=None):
    emb = jnp.concatenate([user_embedding, item_embedding], axis=-1)
    h = emb @ params["w1"].T + params["b1"]
    s = (h @ params["w2"].T + params["b2"]).squeeze()
    if label is not None:
        return jnp.mean((s - label) ** 2)
    return s


if __name__ == "__main__":
    key = jax.random.PRNGKey(0)
    kp, ke, kl = jax.random.split(key, 3)

    B = 8
    params = init_params(kp)
    # Kernel-native input: fused feature-major (10, B) bf16 (rows 0-4 user,
    # rows 5-9 item), as the upstream embedding gather should produce it.
    emb_fm = jax.random.normal(ke, (10, B), jnp.float32).astype(jnp.bfloat16)
    label = jax.random.normal(kl, (B,), jnp.float32)

    # Inference path (no label): per-example scores.
    scores = jax.block_until_ready(pointwise_forward_fused(emb_fm, params))
    # Training path (label given): scalar MSE loss, fused masked SSE in-kernel.
    loss = jax.block_until_ready(pointwise_forward_fused(emb_fm, params, label))

    # Pure-JAX layer-by-layer reference on the same bf16-rounded inputs.
    emb_f32 = emb_fm.astype(jnp.float32).T                    # (B, 10)
    user_embedding = emb_f32[:, :5]
    item_embedding = emb_f32[:, 5:]
    ref_scores = _reference_forward(user_embedding, item_embedding, params)
    lbl_bf = label.astype(jnp.bfloat16).astype(jnp.float32)   # kernel streams bf16 labels
    ref_loss = jnp.mean((ref_scores - lbl_bf) ** 2)

    assert scores.shape == (B,)
    assert jnp.allclose(scores, ref_scores, atol=1e-4, rtol=1e-4)
    assert jnp.allclose(loss, ref_loss, atol=1e-4, rtol=1e-4)

    # PyTorch-layout compatibility wrapper ((B,5)+(B,5) batch-major inputs).
    scores2 = jax.block_until_ready(
        pointwise_forward(user_embedding, item_embedding, params))
    assert jnp.allclose(scores2, ref_scores, atol=1e-4, rtol=1e-4)

    print("KERNEL_OK")
</pallas_src>

<mosaic_0001>
module attributes {stable_mosaic.version = 11 : i64} {
  func.func @_score_kernel(%arg0: i32, %arg1: memref<11xf32, #tpu.memory_space<smem>>, %arg2: memref<10x128xbf16, #tpu.memory_space<vmem>>, %arg3: memref<1x128xf32, #tpu.memory_space<vmem>>) attributes {dimension_semantics = [#tpu.dimension_semantics<parallel>], iteration_bounds = array<i64: 1>, scalar_prefetch = 0 : i64, scratch_operands = 0 : i64, tpu.core_type = #tpu.core_type<tc>, window_params = [{transform_indices = @transform_0, window_bounds = array<i64: 11>}, {transform_indices = @transform_1, window_bounds = array<i64: 10, 128>}, {transform_indices = @transform_2, window_bounds = array<i64: 1, 128>}]} {
    %c0 = arith.constant 0 : index
    %c0_0 = arith.constant 0 : index
    %0 = vector.load %arg2[%c0, %c0_0] : memref<10x128xbf16, #tpu.memory_space<vmem>>, vector<1x128xbf16>
    %1 = arith.extf %0 : vector<1x128xbf16> to vector<1x128xf32>
    %c0_1 = arith.constant 0 : index
    %2 = memref.load %arg1[%c0_1] : memref<11xf32, #tpu.memory_space<smem>>
    %3 = vector.broadcast %2 : f32 to vector<1x128xf32>
    %4 = arith.mulf %1, %3 : vector<1x128xf32>
    %c1 = arith.constant 1 : index
    %c0_2 = arith.constant 0 : index
    %5 = vector.load %arg2[%c1, %c0_2] : memref<10x128xbf16, #tpu.memory_space<vmem>>, vector<1x128xbf16>
    %6 = arith.extf %5 : vector<1x128xbf16> to vector<1x128xf32>
    %c1_3 = arith.constant 1 : index
    %7 = memref.load %arg1[%c1_3] : memref<11xf32, #tpu.memory_space<smem>>
    %8 = vector.broadcast %7 : f32 to vector<1x128xf32>
    %9 = arith.mulf %6, %8 : vector<1x128xf32>
    %10 = arith.addf %4, %9 : vector<1x128xf32>
    %c2 = arith.constant 2 : index
    %c0_4 = arith.constant 0 : index
    %11 = vector.load %arg2[%c2, %c0_4] : memref<10x128xbf16, #tpu.memory_space<vmem>>, vector<1x128xbf16>
    %12 = arith.extf %11 : vector<1x128xbf16> to vector<1x128xf32>
    %c2_5 = arith.constant 2 : index
    %13 = memref.load %arg1[%c2_5] : memref<11xf32, #tpu.memory_space<smem>>
    %14 = vector.broadcast %13 : f32 to vector<1x128xf32>
    %15 = arith.mulf %12, %14 : vector<1x128xf32>
    %16 = arith.addf %10, %15 : vector<1x128xf32>
    %c3 = arith.constant 3 : index
    %c0_6 = arith.constant 0 : index
    %17 = vector.load %arg2[%c3, %c0_6] : memref<10x128xbf16, #tpu.memory_space<vmem>>, vector<1x128xbf16>
    %18 = arith.extf %17 : vector<1x128xbf16> to vector<1x128xf32>
    %c3_7 = arith.constant 3 : index
    %19 = memref.load %arg1[%c3_7] : memref<11xf32, #tpu.memory_space<smem>>
    %20 = vector.broadcast %19 : f32 to vector<1x128xf32>
    %21 = arith.mulf %18, %20 : vector<1x128xf32>
    %22 = arith.addf %16, %21 : vector<1x128xf32>
    %c4 = arith.constant 4 : index
    %c0_8 = arith.constant 0 : index
    %23 = vector.load %arg2[%c4, %c0_8] : memref<10x128xbf16, #tpu.memory_space<vmem>>, vector<1x128xbf16>
    %24 = arith.extf %23 : vector<1x128xbf16> to vector<1x128xf32>
    %c4_9 = arith.constant 4 : index
    %25 = memref.load %arg1[%c4_9] : memref<11xf32, #tpu.memory_space<smem>>
    %26 = vector.broadcast %25 : f32 to vector<1x128xf32>
    %27 = arith.mulf %24, %26 : vector<1x128xf32>
    %28 = arith.addf %22, %27 : vector<1x128xf32>
    %c5 = arith.constant 5 : index
    %c0_10 = arith.constant 0 : index
    %29 = vector.load %arg2[%c5, %c0_10] : memref<10x128xbf16, #tpu.memory_space<vmem>>, vector<1x128xbf16>
    %30 = arith.extf %29 : vector<1x128xbf16> to vector<1x128xf32>
    %c5_11 = arith.constant 5 : index
    %31 = memref.load %arg1[%c5_11] : memref<11xf32, #tpu.memory_space<smem>>
    %32 = vector.broadcast %31 : f32 to vector<1x128xf32>
    %33 = arith.mulf %30, %32 : vector<1x128xf32>
    %34 = arith.addf %28, %33 : vector<1x128xf32>
    %c6 = arith.constant 6 : index
    %c0_12 = arith.constant 0 : index
    %35 = vector.load %arg2[%c6, %c0_12] : memref<10x128xbf16, #tpu.memory_space<vmem>>, vector<1x128xbf16>
    %36 = arith.extf %35 : vector<1x128xbf16> to vector<1x128xf32>
    %c6_13 = arith.constant 6 : index
    %37 = memref.load %arg1[%c6_13] : memref<11xf32, #tpu.memory_space<smem>>
    %38 = vector.broadcast %37 : f32 to vector<1x128xf32>
    %39 = arith.mulf %36, %38 : vector<1x128xf32>
    %40 = arith.addf %34, %39 : vector<1x128xf32>
    %c7 = arith.constant 7 : index
    %c0_14 = arith.constant 0 : index
    %41 = vector.load %arg2[%c7, %c0_14] : memref<10x128xbf16, #tpu.memory_space<vmem>>, vector<1x128xbf16>
    %42 = arith.extf %41 : vector<1x128xbf16> to vector<1x128xf32>
    %c7_15 = arith.constant 7 : index
    %43 = memref.load %arg1[%c7_15] : memref<11xf32, #tpu.memory_space<smem>>
    %44 = vector.broadcast %43 : f32 to vector<1x128xf32>
    %45 = arith.mulf %42, %44 : vector<1x128xf32>
    %46 = arith.addf %40, %45 : vector<1x128xf32>
    %c8 = arith.constant 8 : index
    %c0_16 = arith.constant 0 : index
    %47 = vector.load %arg2[%c8, %c0_16] : memref<10x128xbf16, #tpu.memory_space<vmem>>, vector<1x128xbf16>
    %48 = arith.extf %47 : vector<1x128xbf16> to vector<1x128xf32>
    %c8_17 = arith.constant 8 : index
    %49 = memref.load %arg1[%c8_17] : memref<11xf32, #tpu.memory_space<smem>>
    %50 = vector.broadcast %49 : f32 to vector<1x128xf32>
    %51 = arith.mulf %48, %50 : vector<1x128xf32>
    %52 = arith.addf %46, %51 : vector<1x128xf32>
    %c9 = arith.constant 9 : index
    %c0_18 = arith.constant 0 : index
    %53 = vector.load %arg2[%c9, %c0_18] : memref<10x128xbf16, #tpu.memory_space<vmem>>, vector<1x128xbf16>
    %54 = arith.extf %53 : vector<1x128xbf16> to vector<1x128xf32>
    %c9_19 = arith.constant 9 : index
    %55 = memref.load %arg1[%c9_19] : memref<11xf32, #tpu.memory_space<smem>>
    %56 = vector.broadcast %55 : f32 to vector<1x128xf32>
    %57 = arith.mulf %54, %56 : vector<1x128xf32>
    %58 = arith.addf %52, %57 : vector<1x128xf32>
    %c10 = arith.constant 10 : index
    %59 = memref.load %arg1[%c10] : memref<11xf32, #tpu.memory_space<smem>>
    %60 = vector.broadcast %59 : f32 to vector<1x128xf32>
    %61 = arith.addf %58, %60 : vector<1x128xf32>
    %c0_20 = arith.constant 0 : index
    %c0_21 = arith.constant 0 : index
    %62 = vector.load %arg3[%c0_20, %c0_21] : memref<1x128xf32, #tpu.memory_space<vmem>>, vector<1x128xf32>
    tpu.vector_store %arg3[%c0_20, %c0_21], %61 {strides = array<i32>} : memref<1x128xf32, #tpu.memory_space<vmem>>, vector<1x128xf32>,
    return
  }
  func.func @transform_0(%arg0: i32) -> i32 {
    %c0_i32 = arith.constant 0 : i32
    %c0_i32_0 = arith.constant 0 : i32
    return %c0_i32 : i32
  }
  func.func @transform_1(%arg0: i32) -> (i32, i32) {
    %c0_i32 = arith.constant 0 : i32
    %c0_i32_0 = arith.constant 0 : i32
    return %c0_i32, %arg0 : i32, i32
  }
  func.func @transform_2(%arg0: i32) -> (i32, i32) {
    %c0_i32 = arith.constant 0 : i32
    %c0_i32_0 = arith.constant 0 : i32
    return %c0_i32, %arg0 : i32, i32
  }
}

</mosaic_0001>

<bundles_post_ra>
// kernel: tpu_custom_call.1
= control target key start
LH: loop header
LB: loop body
LE: loop exit
PB: predicated region body
PF: predicated region fallthrough
CT: control target
= control target key end

     0   :  { %7 = vsyncpa [#allocation5], 0  ;;  %s246_s0 = inlined_call_operand.hbm [shape: f32[11], index: 0, kind: input, shape index: {}]   ;;  %s247_s1 = inlined_call_operand.hbm [shape: bf16[10,128], index: 1, kind: input, shape index: {}]   ;;  %s248_s2 = inlined_call_operand.hbm [shape: f32[1,128], index: 2, kind: output, shape index: {}]  }
   0x1   :  { %8 = vsyncpa [#allocation3], 0 }
   0x2   :  { %9 = vsyncpa [#allocation4], 0  ;;  %s15_s11 = sshll.u32 %s246_s0, 4  ;;  %s23_s14 = sshll.u32 %s247_s1, 4  ;;  %s16_s11 = int_to_ptr.hbm [resolvable:$true] %s15_s11  ;;  %s24_s14 = int_to_ptr.hbm [resolvable:$true] %s23_s14 }
   0x3   :  { %s217_s15 = smov [#allocation2]   ;;  %s218_s16 = smov [#allocation6]  }
   0x4   :  { %18 = dma.hbm_to_smem %s16_s11, 16, %s217_s15, [#allocation5]  }
   0x5   :  { %s25_s17 = sshll.u32 %s218_s16, 4  ;;  %s219_s18 = smov 64   ;;  %s26_s17 = int_to_ptr.vmem [resolvable:$true] %s25_s17 }
   0x6   :  { %s220_s19 = smov 4  }
   0x7   :  { %31 = dma.hbm_to_vmem [thread:$0]  %s24_s14, 128, %s26_s17, [#allocation3], %s219_s18, %s219_s18, %s220_s19  }
   0x8   :  { %211 = dma.done.wait [#allocation5], 16  }
   0x9   :  { %212 = vsyncadd [#allocation5], 4294967280 }
   0xa   :  { %213 = dma.done.wait [#allocation3], 128  }
   0xb   :  { %214 = vsyncadd [#allocation3], 4294967168 }
   0xc   :  { %40 = sfence }
   0xd   :  { %s43_s0 = sld [smem:[#allocation2]]  ;;  %v41_v0 = vld [vmem:[#allocation6] sm:$0x1]  ;;  %v53_v1 = vld [vmem:[#allocation6] sm:$0x2]  ;;  %s221_s29 = smov [#allocation7]  }
   0xe   :  { %s136_s20 = sld [smem:[#allocation2 + $0x1]]  ;;  %v42_v2 = vunpack.c.l.bf16 %v41_v0  ;;  %v69_v3 = vld [vmem:[#allocation6] sm:$0x4]  ;;  %v54_v4 = vunpack.c.l.bf16 %v53_v1  ;;  %v85_v8 = vld [vmem:[#allocation6] sm:$0x8]  ;;  %s123_s30 = sshll.u32 %s221_s29, 4  ;;  %s124_s30 = int_to_ptr.vmem [resolvable:$true] %s123_s30 }
   0xf   :  { %s137_s21 = sld [smem:[#allocation2 + $0x2]]  ;;  %v70_v7 = vunpack.c.l.bf16 %v69_v3  ;;  %v86_v17 = vunpack.c.l.bf16 %v85_v8  ;;  %v101_v26 = vld [vmem:[#allocation6 + $0x4] sm:$0x1]  ;;  %s125_s5 = sshll.u32 %s248_s2, 4  ;;  %s126_s5 = int_to_ptr.hbm [resolvable:$true] %s125_s5 }
  0x10   :  { %s138_s1 = sld [smem:[#allocation2 + $0x3]]  ;;  %v102_v33 = vunpack.c.l.bf16 %v101_v26 }
  0x11   :  { %s139_s22 = sld [smem:[#allocation2 + $0x4]] }
  0x12   :  { %s140_s23 = sld [smem:[#allocation2 + $0x5]] }
  0x13   :  { %v44_v5 = vstv %s43_s0  ;;  %s141_s24 = sld [smem:[#allocation2 + $0x6]] }
  0x14   :  { %v47_v6 = vstv %s136_s20  ;;  %s142_s25 = sld [smem:[#allocation2 + $0x7]]  ;;  %v45_v9 = vmul.f32 %v44_v5, %v42_v2 }
  0x15   :  { %v48_v10 = vmul.f32 %v47_v6, %v42_v2  ;;  %v56_v11 = vstv %s137_s21  ;;  %s144_s26 = sld [smem:[#allocation2 + $0x9]] }
  0x16   :  { %v57_v12 = vmul.f32 %v56_v11, %v54_v4  ;;  %v63_v13 = vstv %s138_s1  ;;  %s143_s27 = sld [smem:[#allocation2 + $0x8]] }
  0x17   :  { %v50_v14 = vrot.slane %v48_v10, 1  ;;  %v64_v15 = vmul.f32 %v63_v13, %v54_v4  ;;  %v72_v16 = vstv %s139_s22  ;;  %s145_s28 = sld [smem:[#allocation2 + $0xa]] }
  0x18   :  { %v59_v18 = vrot.slane %v57_v12, 2  ;;  %v73_v19 = vmul.f32 %v72_v16, %v70_v7  ;;  %v79_v20 = vstv %s140_s23 }
  0x19   :  { %v52_v21 = vadd.f32 %v50_v14, %v45_v9  ;;  %v66_v22 = vrot.slane %v64_v15, 3  ;;  %v80_v23 = vmul.f32 %v79_v20, %v70_v7  ;;  %v88_v24 = vstv %s141_s24 }
  0x1a   :  { %v95_v25 = vstv %s142_s25  ;;  %v75_v28 = vrot.slane %v73_v19, 4  ;;  %v89_v29 = vmul.f32 %v88_v24, %v86_v17 }
  0x1b   :  { %v61_v27 = vadd.f32 %v59_v18, %v52_v21  ;;  %v82_v31 = vrot.slane %v80_v23, 5  ;;  %v96_v32 = vmul.f32 %v95_v25, %v86_v17  ;;  %v108_v34 = vstv %s144_s26 }
  0x1c   :  { %v91_v36 = vrot.slane %v89_v29, 6  ;;  %v104_v37 = vstv %s143_s27  ;;  %v109_v40 = vmul.f32 %v108_v34, %v102_v33 }
  0x1d   :  { %v68_v30 = vadd.f32 %v66_v22, %v61_v27  ;;  %v98_v39 = vrot.slane %v96_v32, 7  ;;  %v105_v42 = vmul.f32 %v104_v37, %v102_v33  ;;  %v115_v46 = vstv %s145_s28 }
  0x1e   :  { %v111_v44 = vrot.slane %v109_v40, 1 }
  0x1f   :  { %v77_v35 = vadd.f32 %v75_v28, %v68_v30 }
  0x21   :  { %v84_v38 = vadd.f32 %v82_v31, %v77_v35 }
  0x23   :  { %v93_v41 = vadd.f32 %v91_v36, %v84_v38 }
  0x25   :  { %v100_v43 = vadd.f32 %v98_v39, %v93_v41 }
  0x27   :  { %v106_v45 = vadd.f32 %v105_v42, %v100_v43 }
  0x29   :  { %v113_v47 = vadd.f32 %v111_v44, %v106_v45 }
  0x2b   :  { %v116_v48 = vadd.f32 %v115_v46, %v113_v47 }
  0x2d   :  { %117 = vst [vmem:[#allocation7] sm:$0x1] %v116_v48 }
  0x2e   :  { %128 = dma.vmem_to_hbm [thread:$0]  %s124_s30, 16, %s126_s5, [#allocation4]  }
  0x2f   :  { %215 = dma.done.wait [#allocation4], 16  }
  0x30   :  { %216 = vsyncadd [#allocation4], 4294967280 }
  0x31   :  { %133 = vsyncpa [#allocation3], 1 }
  0x32   :  { %134 = vsyncpa [#allocation4], 1 }
  0x33   :  { %135 = vsyncpa [#allocation5], 1 }

</bundles_post_ra>
